<compile_context>
chip_gen: v6e
topology: v6e:2x2x1
jax: 0.10.0
libtpu: 0.0.40
codegen_flags: <defaults>
</compile_context>

<pallas_src>
import math
import functools

import jax
import jax.numpy as jnp
from jax.experimental import pallas as pl
from jax.experimental.pallas import tpu as pltpu


# -----------------------------------------------------------------------------
# Fused kernel: per-layer folded BN + ReLU, im2col build, one MXU matmul + bias.
# -----------------------------------------------------------------------------
def _spatial_block_kernel(x_ref, scale_ref, shift_ref, w_ref, b_ref, o_ref,
                          im_ref, *, L, C, M, H, OH, MAXKH, MAXPAD):
    LC = L * C

    # Folded BatchNorm (eval mode) + ReLU for all layers at once.  x holds each
    # input channel once; replicate it across layers in-register (sublane concat)
    # so each layer applies its own scale/shift without tripling HBM traffic.
    xv = x_ref[...]                                            # (C, H*M)
    xrep = jnp.concatenate([xv] * L, axis=0)                   # (L*C, H*M)
    act = jnp.maximum(xrep * scale_ref[...] + shift_ref[...], 0.0)

    # im2col: row block j holds the activation shifted by height tap j (the conv
    # is height-only).  Only out-of-image pad columns are zero-filled.
    for j in range(MAXKH):                       # static -> fully unrolled
        lo = max(0, MAXPAD - j)                  # first output row hitting real data
        hi = min(OH, MAXPAD - j + H)             # one past the last such row
        r0, r1 = j * LC, (j + 1) * LC
        if hi <= lo:                             # tap never overlaps the image
            im_ref[r0:r1, :] = jnp.zeros((LC, OH * M), jnp.float32)
            continue
        if lo > 0:
            im_ref[r0:r1, : lo * M] = jnp.zeros((LC, lo * M), jnp.float32)
        if hi < OH:
            im_ref[r0:r1, hi * M:] = jnp.zeros((LC, (OH - hi) * M), jnp.float32)
        src = (lo + j - MAXPAD) * M
        im_ref[r0:r1, lo * M: hi * M] = act[:, src: src + (hi - lo) * M]

    # One MXU matmul covering every layer and every tap (K = MAXKH * L * C).
    out = jnp.dot(w_ref[...], im_ref[...], preferred_element_type=jnp.float32)
    o_ref[...] = out + b_ref[...]                # per-output-channel bias
    # TODO(synk): Dropout2d(0.2) is identity in eval/inference mode; omitted.


# -----------------------------------------------------------------------------
# Module geometry + deterministic parameter init (matches the PyTorch module).
# -----------------------------------------------------------------------------
def spatial_block_geometry(num_spatial_layers, input_height):
    kernel_list = tuple((input_height // (i + 1), 1) for i in range(num_spatial_layers))
    padding = tuple((math.floor((k[0] - 1) / 2), 0) for k in kernel_list)
    return kernel_list, padding


def init_spatial_block_params(key, in_channels, out_channels, kernel_list):
    params = []
    for (kh, kw) in kernel_list:
        key, k1, k2, k3, k4, k5, k6 = jax.random.split(key, 7)
        gamma = jax.random.uniform(k1, (in_channels,), minval=0.5, maxval=1.5)
        beta = 0.1 * jax.random.normal(k2, (in_channels,))
        mean = 0.1 * jax.random.normal(k3, (in_channels,))
        var = jax.random.uniform(k4, (in_channels,), minval=0.5, maxval=1.5)
        fan_in = in_channels * kh * kw
        w = jax.random.normal(k5, (out_channels, in_channels, kh, kw)) / math.sqrt(fan_in)
        b = 0.1 * jax.random.normal(k6, (out_channels,))
        params.append((gamma, beta, mean, var, w, b))
    return tuple(params)


# -----------------------------------------------------------------------------
# Forward: one fused pallas_call for the whole SpatialBlock.
# -----------------------------------------------------------------------------
@functools.partial(jax.jit, static_argnums=(2, 3, 4))
def spatial_block_forward(x, params_list, kernel_list, padding_list, stride):
    """x: (N, C, H, W) float32 NCHW.  Returns (N, L*OC, OH, W) = torch.cat(feats, 1)."""
    assert tuple(stride) == (1, 1), "Pallas SpatialBlock implemented for stride=(1,1)"
    N, C, H, W = x.shape
    L = len(kernel_list)
    OC = params_list[0][4].shape[0]
    eps = 1e-5

    # All layers must agree on output height or the channel concat (and the
    # original torch.cat) is ill-defined.
    ohs = [H + 2 * ph - kh + 1 for (kh, _), (ph, _) in zip(kernel_list, padding_list)]
    if len(set(ohs)) != 1:
        raise ValueError(f"Per-layer output heights differ: {ohs}")
    OH = ohs[0]
    MAXKH = max(kh for kh, _ in kernel_list)
    MAXPAD = max(ph for ph, _ in padding_list)
    M = N * W
    LC = L * C
    R = L * OC
    K = MAXKH * LC

    # ---- Parameter packing (tiny; fused by XLA under jit). --------------------
    scales, shifts, biases, wblocks = [], [], [], []
    for l, ((kh, _), (ph, _), (gamma, beta, mean, var, w, b)) in enumerate(
            zip(kernel_list, padding_list, params_list)):
        inv_std = 1.0 / jnp.sqrt(var.astype(jnp.float32) + eps)
        s = gamma.astype(jnp.float32) * inv_std
        scales.append(s)
        shifts.append(beta.astype(jnp.float32) - mean.astype(jnp.float32) * s)
        biases.append(b.astype(jnp.float32))
        off = MAXPAD - ph                                     # global tap offset
        wk = jnp.transpose(w[:, :, :, 0].astype(jnp.float32), (0, 2, 1))  # (OC, kh, C)
        wl = jnp.zeros((OC, MAXKH, L, C), jnp.float32)
        wl = wl.at[:, off:off + kh, l, :].set(wk)             # zero-pad taps + layer slot
        wblocks.append(wl.reshape(OC, K))
    scale = jnp.concatenate(scales).reshape(LC, 1)
    shift = jnp.concatenate(shifts).reshape(LC, 1)
    b2 = jnp.concatenate(biases).reshape(R, 1)
    w2 = jnp.concatenate(wblocks, axis=0)                     # (R, K)

    # Lane-dense activation operand: (C, H*N*W), columns ordered (h, n, w).
    xr = jnp.transpose(x, (1, 2, 0, 3)).reshape(C, H * M).astype(jnp.float32)

    kernel = functools.partial(_spatial_block_kernel, L=L, C=C, M=M, H=H, OH=OH,
                               MAXKH=MAXKH, MAXPAD=MAXPAD)

    # One pallas_call for the whole block: everything fits in one VMEM-resident
    # step at these sizes (~0.3 MiB total).  For large N*W, tile the lane axis
    # with a "parallel" grid dimension instead (uses both TensorCores on v7x)
    # and budget VMEM against 64 MiB.
    out2d = pl.pallas_call(
        kernel,
        out_shape=jax.ShapeDtypeStruct((R, OH * M), jnp.float32),
        grid=(1,),
        in_specs=[
            pl.BlockSpec((C, H * M), lambda i: (0, 0)),
            pl.BlockSpec((LC, 1), lambda i: (0, 0)),
            pl.BlockSpec((LC, 1), lambda i: (0, 0)),
            pl.BlockSpec((R, K), lambda i: (0, 0)),
            pl.BlockSpec((R, 1), lambda i: (0, 0)),
        ],
        out_specs=pl.BlockSpec((R, OH * M), lambda i: (0, 0)),
        scratch_shapes=[pltpu.VMEM((K, OH * M), jnp.float32)],
        compiler_params=pltpu.CompilerParams(dimension_semantics=("arbitrary",)),
    )(xr, scale, shift, w2, b2)

    # (L*OC, OH*N*W) -> (N, L*OC, OH, W): tiny (~33 KB) fix-up to return NCHW.
    return jnp.transpose(out2d.reshape(R, OH, N, W), (2, 0, 1, 3))


# -----------------------------------------------------------------------------
# Pure-JAX reference (eval-mode BN + ReLU + conv + bias) for the sanity check.
# -----------------------------------------------------------------------------
def _reference_spatial_block(x, params_list, kernel_list, padding_list):
    eps = 1e-5
    feats = []
    for (kh, kw), (ph, pw), (gamma, beta, mean, var, w, b) in zip(
            kernel_list, padding_list, params_list):
        a = (x - mean[None, :, None, None]) / jnp.sqrt(var[None, :, None, None] + eps)
        a = a * gamma[None, :, None, None] + beta[None, :, None, None]
        a = jnp.maximum(a, 0.0)
        out = jax.lax.conv_general_dilated(
            a, w, window_strides=(1, 1), padding=[(ph, ph), (pw, pw)],
            dimension_numbers=('NCHW', 'OIHW', 'NCHW'),
            precision=jax.lax.Precision.HIGHEST)
        feats.append(out + b[None, :, None, None])
    return jnp.concatenate(feats, axis=1)


if __name__ == "__main__":
    # SpatialBlock(in_channels=4, out_channels=8, num_spatial_layers=3,
    #              stride=(1,1), input_height=12)
    # H=12 -> per-layer kernel heights (12, 6, 4) all share parity, so every layer
    # produces the same OH (a requirement of torch.cat in the original module).
    N, C_in, H, W = 2, 4, 12, 16
    out_channels = 8
    num_spatial_layers = 3
    stride = (1, 1)

    key = jax.random.PRNGKey(0)
    kx, kp = jax.random.split(key)
    x = jax.random.normal(kx, (N, C_in, H, W), dtype=jnp.float32)

    kernel_list, padding_list = spatial_block_geometry(num_spatial_layers, H)
    params = init_spatial_block_params(kp, C_in, out_channels, kernel_list)

    out = spatial_block_forward(x, params, kernel_list, padding_list, stride)
    out = jax.block_until_ready(out)

    expected_oh = H + 2 * padding_list[0][0] - kernel_list[0][0] + 1
    assert out.shape == (N, out_channels * num_spatial_layers, expected_oh, W), out.shape

    ref = _reference_spatial_block(x, params, kernel_list, padding_list)
    max_err = float(jnp.max(jnp.abs(out - ref)))
    assert max_err < 1e-3, f"max abs error vs reference too large: {max_err}"

    print("KERNEL_OK")
</pallas_src>

<mosaic_0001>
module attributes {stable_mosaic.version = 11 : i64} {
  func.func @_spatial_block_kernel(%arg0: i32, %arg1: memref<4x384xf32, #tpu.memory_space<vmem>>, %arg2: memref<12x1xf32, #tpu.memory_space<vmem>>, %arg3: memref<12x1xf32, #tpu.memory_space<vmem>>, %arg4: memref<24x144xf32, #tpu.memory_space<vmem>>, %arg5: memref<24x1xf32, #tpu.memory_space<vmem>>, %arg6: memref<24x352xf32, #tpu.memory_space<vmem>>, %arg7: memref<144x352xf32, #tpu.memory_space<vmem>>) attributes {dimension_semantics = [#tpu.dimension_semantics<arbitrary>], iteration_bounds = array<i64: 1>, scalar_prefetch = 0 : i64, scratch_operands = 1 : i64, tpu.core_type = #tpu.core_type<tc>, window_params = [{pipeline_mode = #tpu.pipeline_mode<synchronous>, transform_indices = @transform_0, window_bounds = array<i64: 4, 384>}, {pipeline_mode = #tpu.pipeline_mode<synchronous>, transform_indices = @transform_1, window_bounds = array<i64: 12, 1>}, {pipeline_mode = #tpu.pipeline_mode<synchronous>, transform_indices = @transform_2, window_bounds = array<i64: 12, 1>}, {pipeline_mode = #tpu.pipeline_mode<synchronous>, transform_indices = @transform_3, window_bounds = array<i64: 24, 144>}, {pipeline_mode = #tpu.pipeline_mode<synchronous>, transform_indices = @transform_4, window_bounds = array<i64: 24, 1>}, {pipeline_mode = #tpu.pipeline_mode<synchronous>, transform_indices = @transform_5, window_bounds = array<i64: 24, 352>}]} {
    %c0 = arith.constant 0 : index
    %c0_0 = arith.constant 0 : index
    %0 = vector.load %arg1[%c0, %c0_0] : memref<4x384xf32, #tpu.memory_space<vmem>>, vector<4x384xf32>
    %1 = tpu.concatenate %0, %0, %0 in 0 : vector<4x384xf32>, vector<4x384xf32>, vector<4x384xf32> -> vector<12x384xf32>
    %c0_1 = arith.constant 0 : index
    %c0_2 = arith.constant 0 : index
    %2 = vector.load %arg2[%c0_1, %c0_2] : memref<12x1xf32, #tpu.memory_space<vmem>>, vector<12x1xf32>
    %3 = vector.broadcast %2 : vector<12x1xf32> to vector<12x384xf32>
    %4 = arith.mulf %1, %3 : vector<12x384xf32>
    %c0_3 = arith.constant 0 : index
    %c0_4 = arith.constant 0 : index
    %5 = vector.load %arg3[%c0_3, %c0_4] : memref<12x1xf32, #tpu.memory_space<vmem>>, vector<12x1xf32>
    %6 = vector.broadcast %5 : vector<12x1xf32> to vector<12x384xf32>
    %7 = arith.addf %4, %6 : vector<12x384xf32>
    %cst = arith.constant 0.000000e+00 : f32
    %8 = vector.broadcast %cst : f32 to vector<12x384xf32>
    %9 = arith.maximumf %7, %8 : vector<12x384xf32>
    %cst_5 = arith.constant 0.000000e+00 : f32
    %10 = vector.broadcast %cst_5 : f32 to vector<12x160xf32>
    %c0_6 = arith.constant 0 : index
    %c0_7 = arith.constant 0 : index
    %11 = vector.load %arg7[%c0_6, %c0_7] : memref<144x352xf32, #tpu.memory_space<vmem>>, vector<12x160xf32>
    tpu.vector_store %arg7[%c0_6, %c0_7], %10 {strides = array<i32>} : memref<144x352xf32, #tpu.memory_space<vmem>>, vector<12x160xf32>,
    %12 = vector.extract_strided_slice %9 {offsets = [0, 0], sizes = [12, 192], strides = [1, 1]} : vector<12x384xf32> to vector<12x192xf32>
    %c0_8 = arith.constant 0 : index
    %c160 = arith.constant 160 : index
    %13 = vector.load %arg7[%c0_8, %c160] : memref<144x352xf32, #tpu.memory_space<vmem>>, vector<12x192xf32>
    tpu.vector_store %arg7[%c0_8, %c160], %12 {strides = array<i32>} : memref<144x352xf32, #tpu.memory_space<vmem>>, vector<12x192xf32>,
    %cst_9 = arith.constant 0.000000e+00 : f32
    %14 = vector.broadcast %cst_9 : f32 to vector<12x128xf32>
    %c12 = arith.constant 12 : index
    %c0_10 = arith.constant 0 : index
    %15 = vector.load %arg7[%c12, %c0_10] : memref<144x352xf32, #tpu.memory_space<vmem>>, vector<12x128xf32>
    tpu.vector_store %arg7[%c12, %c0_10], %14 {strides = array<i32>} : memref<144x352xf32, #tpu.memory_space<vmem>>, vector<12x128xf32>,
    %16 = vector.extract_strided_slice %9 {offsets = [0, 0], sizes = [12, 224], strides = [1, 1]} : vector<12x384xf32> to vector<12x224xf32>
    %c12_11 = arith.constant 12 : index
    %c128 = arith.constant 128 : index
    %17 = vector.load %arg7[%c12_11, %c128] : memref<144x352xf32, #tpu.memory_space<vmem>>, vector<12x224xf32>
    tpu.vector_store %arg7[%c12_11, %c128], %16 {strides = array<i32>} : memref<144x352xf32, #tpu.memory_space<vmem>>, vector<12x224xf32>,
    %cst_12 = arith.constant 0.000000e+00 : f32
    %18 = vector.broadcast %cst_12 : f32 to vector<12x96xf32>
    %c24 = arith.constant 24 : index
    %c0_13 = arith.constant 0 : index
    %19 = vector.load %arg7[%c24, %c0_13] : memref<144x352xf32, #tpu.memory_space<vmem>>, vector<12x96xf32>
    tpu.vector_store %arg7[%c24, %c0_13], %18 {strides = array<i32>} : memref<144x352xf32, #tpu.memory_space<vmem>>, vector<12x96xf32>,
    %20 = vector.extract_strided_slice %9 {offsets = [0, 0], sizes = [12, 256], strides = [1, 1]} : vector<12x384xf32> to vector<12x256xf32>
    %c24_14 = arith.constant 24 : index
    %c96 = arith.constant 96 : index
    %21 = vector.load %arg7[%c24_14, %c96] : memref<144x352xf32, #tpu.memory_space<vmem>>, vector<12x256xf32>
    tpu.vector_store %arg7[%c24_14, %c96], %20 {strides = array<i32>} : memref<144x352xf32, #tpu.memory_space<vmem>>, vector<12x256xf32>,
    %cst_15 = arith.constant 0.000000e+00 : f32
    %22 = vector.broadcast %cst_15 : f32 to vector<12x64xf32>
    %c36 = arith.constant 36 : index
    %c0_16 = arith.constant 0 : index
    %23 = vector.load %arg7[%c36, %c0_16] : memref<144x352xf32, #tpu.memory_space<vmem>>, vector<12x64xf32>
    tpu.vector_store %arg7[%c36, %c0_16], %22 {strides = array<i32>} : memref<144x352xf32, #tpu.memory_space<vmem>>, vector<12x64xf32>,
    %24 = vector.extract_strided_slice %9 {offsets = [0, 0], sizes = [12, 288], strides = [1, 1]} : vector<12x384xf32> to vector<12x288xf32>
    %c36_17 = arith.constant 36 : index
    %c64 = arith.constant 64 : index
    %25 = vector.load %arg7[%c36_17, %c64] : memref<144x352xf32, #tpu.memory_space<vmem>>, vector<12x288xf32>
    tpu.vector_store %arg7[%c36_17, %c64], %24 {strides = array<i32>} : memref<144x352xf32, #tpu.memory_space<vmem>>, vector<12x288xf32>,
    %cst_18 = arith.constant 0.000000e+00 : f32
    %26 = vector.broadcast %cst_18 : f32 to vector<12x32xf32>
    %c48 = arith.constant 48 : index
    %c0_19 = arith.constant 0 : index
    %27 = vector.load %arg7[%c48, %c0_19] : memref<144x352xf32, #tpu.memory_space<vmem>>, vector<12x32xf32>
    tpu.vector_store %arg7[%c48, %c0_19], %26 {strides = array<i32>} : memref<144x352xf32, #tpu.memory_space<vmem>>, vector<12x32xf32>,
    %28 = vector.extract_strided_slice %9 {offsets = [0, 0], sizes = [12, 320], strides = [1, 1]} : vector<12x384xf32> to vector<12x320xf32>
    %c48_20 = arith.constant 48 : index
    %c32 = arith.constant 32 : index
    %29 = vector.load %arg7[%c48_20, %c32] : memref<144x352xf32, #tpu.memory_space<vmem>>, vector<12x320xf32>
    tpu.vector_store %arg7[%c48_20, %c32], %28 {strides = array<i32>} : memref<144x352xf32, #tpu.memory_space<vmem>>, vector<12x320xf32>,
    %30 = vector.extract_strided_slice %9 {offsets = [0, 0], sizes = [12, 352], strides = [1, 1]} : vector<12x384xf32> to vector<12x352xf32>
    %c60 = arith.constant 60 : index
    %c0_21 = arith.constant 0 : index
    %31 = vector.load %arg7[%c60, %c0_21] : memref<144x352xf32, #tpu.memory_space<vmem>>, vector<12x352xf32>
    tpu.vector_store %arg7[%c60, %c0_21], %30 {strides = array<i32>} : memref<144x352xf32, #tpu.memory_space<vmem>>, vector<12x352xf32>,
    %32 = vector.extract_strided_slice %9 {offsets = [0, 32], sizes = [12, 352], strides = [1, 1]} : vector<12x384xf32> to vector<12x352xf32>
    %c72 = arith.constant 72 : index
    %c0_22 = arith.constant 0 : index
    %33 = vector.load %arg7[%c72, %c0_22] : memref<144x352xf32, #tpu.memory_space<vmem>>, vector<12x352xf32>
    tpu.vector_store %arg7[%c72, %c0_22], %32 {strides = array<i32>} : memref<144x352xf32, #tpu.memory_space<vmem>>, vector<12x352xf32>,
    %cst_23 = arith.constant 0.000000e+00 : f32
    %34 = vector.broadcast %cst_23 : f32 to vector<12x32xf32>
    %c84 = arith.constant 84 : index
    %c320 = arith.constant 320 : index
    %35 = vector.load %arg7[%c84, %c320] : memref<144x352xf32, #tpu.memory_space<vmem>>, vector<12x32xf32>
    tpu.vector_store %arg7[%c84, %c320], %34 {strides = array<i32>} : memref<144x352xf32, #tpu.memory_space<vmem>>, vector<12x32xf32>,
    %36 = vector.extract_strided_slice %9 {offsets = [0, 64], sizes = [12, 320], strides = [1, 1]} : vector<12x384xf32> to vector<12x320xf32>
    %c84_24 = arith.constant 84 : index
    %c0_25 = arith.constant 0 : index
    %37 = vector.load %arg7[%c84_24, %c0_25] : memref<144x352xf32, #tpu.memory_space<vmem>>, vector<12x320xf32>
    tpu.vector_store %arg7[%c84_24, %c0_25], %36 {strides = array<i32>} : memref<144x352xf32, #tpu.memory_space<vmem>>, vector<12x320xf32>,
    %cst_26 = arith.constant 0.000000e+00 : f32
    %38 = vector.broadcast %cst_26 : f32 to vector<12x64xf32>
    %c96_27 = arith.constant 96 : index
    %c288 = arith.constant 288 : index
    %39 = vector.load %arg7[%c96_27, %c288] : memref<144x352xf32, #tpu.memory_space<vmem>>, vector<12x64xf32>
    tpu.vector_store %arg7[%c96_27, %c288], %38 {strides = array<i32>} : memref<144x352xf32, #tpu.memory_space<vmem>>, vector<12x64xf32>,
    %40 = vector.extract_strided_slice %9 {offsets = [0, 96], sizes = [12, 288], strides = [1, 1]} : vector<12x384xf32> to vector<12x288xf32>
    %c96_28 = arith.constant 96 : index
    %c0_29 = arith.constant 0 : index
    %41 = vector.load %arg7[%c96_28, %c0_29] : memref<144x352xf32, #tpu.memory_space<vmem>>, vector<12x288xf32>
    tpu.vector_store %arg7[%c96_28, %c0_29], %40 {strides = array<i32>} : memref<144x352xf32, #tpu.memory_space<vmem>>, vector<12x288xf32>,
    %cst_30 = arith.constant 0.000000e+00 : f32
    %42 = vector.broadcast %cst_30 : f32 to vector<12x96xf32>
    %c108 = arith.constant 108 : index
    %c256 = arith.constant 256 : index
    %43 = vector.load %arg7[%c108, %c256] : memref<144x352xf32, #tpu.memory_space<vmem>>, vector<12x96xf32>
    tpu.vector_store %arg7[%c108, %c256], %42 {strides = array<i32>} : memref<144x352xf32, #tpu.memory_space<vmem>>, vector<12x96xf32>,
    %44 = vector.extract_strided_slice %9 {offsets = [0, 128], sizes = [12, 256], strides = [1, 1]} : vector<12x384xf32> to vector<12x256xf32>
    %c108_31 = arith.constant 108 : index
    %c0_32 = arith.constant 0 : index
    %45 = vector.load %arg7[%c108_31, %c0_32] : memref<144x352xf32, #tpu.memory_space<vmem>>, vector<12x256xf32>
    tpu.vector_store %arg7[%c108_31, %c0_32], %44 {strides = array<i32>} : memref<144x352xf32, #tpu.memory_space<vmem>>, vector<12x256xf32>,
    %cst_33 = arith.constant 0.000000e+00 : f32
    %46 = vector.broadcast %cst_33 : f32 to vector<12x128xf32>
    %c120 = arith.constant 120 : index
    %c224 = arith.constant 224 : index
    %47 = vector.load %arg7[%c120, %c224] : memref<144x352xf32, #tpu.memory_space<vmem>>, vector<12x128xf32>
    tpu.vector_store %arg7[%c120, %c224], %46 {strides = array<i32>} : memref<144x352xf32, #tpu.memory_space<vmem>>, vector<12x128xf32>,
    %48 = vector.extract_strided_slice %9 {offsets = [0, 160], sizes = [12, 224], strides = [1, 1]} : vector<12x384xf32> to vector<12x224xf32>
    %c120_34 = arith.constant 120 : index
    %c0_35 = arith.constant 0 : index
    %49 = vector.load %arg7[%c120_34, %c0_35] : memref<144x352xf32, #tpu.memory_space<vmem>>, vector<12x224xf32>
    tpu.vector_store %arg7[%c120_34, %c0_35], %48 {strides = array<i32>} : memref<144x352xf32, #tpu.memory_space<vmem>>, vector<12x224xf32>,
    %cst_36 = arith.constant 0.000000e+00 : f32
    %50 = vector.broadcast %cst_36 : f32 to vector<12x160xf32>
    %c132 = arith.constant 132 : index
    %c192 = arith.constant 192 : index
    %51 = vector.load %arg7[%c132, %c192] : memref<144x352xf32, #tpu.memory_space<vmem>>, vector<12x160xf32>
    tpu.vector_store %arg7[%c132, %c192], %50 {strides = array<i32>} : memref<144x352xf32, #tpu.memory_space<vmem>>, vector<12x160xf32>,
    %52 = vector.extract_strided_slice %9 {offsets = [0, 192], sizes = [12, 192], strides = [1, 1]} : vector<12x384xf32> to vector<12x192xf32>
    %c132_37 = arith.constant 132 : index
    %c0_38 = arith.constant 0 : index
    %53 = vector.load %arg7[%c132_37, %c0_38] : memref<144x352xf32, #tpu.memory_space<vmem>>, vector<12x192xf32>
    tpu.vector_store %arg7[%c132_37, %c0_38], %52 {strides = array<i32>} : memref<144x352xf32, #tpu.memory_space<vmem>>, vector<12x192xf32>,
    %c0_39 = arith.constant 0 : index
    %c0_40 = arith.constant 0 : index
    %54 = vector.load %arg4[%c0_39, %c0_40] : memref<24x144xf32, #tpu.memory_space<vmem>>, vector<24x144xf32>
    %c0_41 = arith.constant 0 : index
    %c0_42 = arith.constant 0 : index
    %55 = vector.load %arg7[%c0_41, %c0_42] : memref<144x352xf32, #tpu.memory_space<vmem>>, vector<144x352xf32>
    %cst_43 = arith.constant dense<0.000000e+00> : vector<24x352xf32>
    %56 = tpu.matmul %54, %55, %cst_43 {dimension_numbers = #tpu.dot_dimension_numbers<[1], [0], [0], [1], [0, 0, 1, 1], [], []>} : vector<24x144xf32>, vector<144x352xf32>, vector<24x352xf32> -> vector<24x352xf32>
    %c0_44 = arith.constant 0 : index
    %c0_45 = arith.constant 0 : index
    %57 = vector.load %arg5[%c0_44, %c0_45] : memref<24x1xf32, #tpu.memory_space<vmem>>, vector<24x1xf32>
    %58 = vector.broadcast %57 : vector<24x1xf32> to vector<24x352xf32>
    %59 = arith.addf %56, %58 : vector<24x352xf32>
    %c0_46 = arith.constant 0 : index
    %c0_47 = arith.constant 0 : index
    %60 = vector.load %arg6[%c0_46, %c0_47] : memref<24x352xf32, #tpu.memory_space<vmem>>, vector<24x352xf32>
    tpu.vector_store %arg6[%c0_46, %c0_47], %59 {strides = array<i32>} : memref<24x352xf32, #tpu.memory_space<vmem>>, vector<24x352xf32>,
    return
  }
  func.func @transform_0(%arg0: i32) -> (i32, i32) {
    %c0_i32 = arith.constant 0 : i32
    %c0_i32_0 = arith.constant 0 : i32
    %c0_i32_1 = arith.constant 0 : i32
    return %c0_i32, %c0_i32_0 : i32, i32
  }
  func.func @transform_1(%arg0: i32) -> (i32, i32) {
    %c0_i32 = arith.constant 0 : i32
    %c0_i32_0 = arith.constant 0 : i32
    %c0_i32_1 = arith.constant 0 : i32
    return %c0_i32, %c0_i32_0 : i32, i32
  }
  func.func @transform_2(%arg0: i32) -> (i32, i32) {
    %c0_i32 = arith.constant 0 : i32
    %c0_i32_0 = arith.constant 0 : i32
    %c0_i32_1 = arith.constant 0 : i32
    return %c0_i32, %c0_i32_0 : i32, i32
  }
  func.func @transform_3(%arg0: i32) -> (i32, i32) {
    %c0_i32 = arith.constant 0 : i32
    %c0_i32_0 = arith.constant 0 : i32
    %c0_i32_1 = arith.constant 0 : i32
    return %c0_i32, %c0_i32_0 : i32, i32
  }
  func.func @transform_4(%arg0: i32) -> (i32, i32) {
    %c0_i32 = arith.constant 0 : i32
    %c0_i32_0 = arith.constant 0 : i32
    %c0_i32_1 = arith.constant 0 : i32
    return %c0_i32, %c0_i32_0 : i32, i32
  }
  func.func @transform_5(%arg0: i32) -> (i32, i32) {
    %c0_i32 = arith.constant 0 : i32
    %c0_i32_0 = arith.constant 0 : i32
    %c0_i32_1 = arith.constant 0 : i32
    return %c0_i32, %c0_i32_0 : i32, i32
  }
}

</mosaic_0001>

<bundles_post_ra>
// kernel: spatial_block_forward.1
= control target key start
LH: loop header
LB: loop body
LE: loop exit
PB: predicated region body
PF: predicated region fallthrough
CT: control target
= control target key end

     0   :  { %v556_v0 = vmov 0   ;;  %vm121_vm0 = vcmask 785412   ;;  %v557_v5 = vmov 0.0   ;;  %vm102_vm1 = vcmask 785408   ;;  %s559_s28 = smov 32   ;;  %s560_s29 = smov 64   ;;  %s819_s1 = inlined_call_operand.vmem [shape: f32[12,1], index: 1, kind: input, shape index: {}]   ;;  %s820_s2 = inlined_call_operand.vmem [shape: f32[12,1], index: 2, kind: input, shape index: {}]   ;;  %s821_s0 = inlined_call_operand.vmem [shape: f32[4,384], index: 0, kind: input, shape index: {}]   ;;  %s822_s4 = inlined_call_operand.vmem [shape: f32[24,1], index: 4, kind: input, shape index: {}]   ;;  %s823_s3 = inlined_call_operand.vmem [shape: f32[24,144], index: 3, kind: input, shape index: {}]   ;;  %s824_s5 = inlined_call_operand.vmem [shape: f32[24,352], index: 5, kind: output, shape index: {}]  }
   0x1   :  { %552 = vset.pattern.permute.xlu1 %v556_v0  ;;  %551 = vset.pattern.permute.xlu0 %v556_v0  ;;  %v35_v1 = vld [vmem:[%s819_s1 + $0x8] sm:$0xf]  ;;  %v34_v2 = vld [vmem:[%s819_s1] sm:$0xff]  ;;  %254 = vst.msk [vmem:[#allocation2 + $0x148] sm:$0xf0] %vm121_vm0, %v557_v5  ;;  %vm143_vm2 = vcmask 1048320  }
   0x2   :  { %43 = vperm.xlu1 %552, %v35_v1   ;;  %38 = vperm.xlu0 %551, %v34_v2   ;;  %v53_v3 = vld [vmem:[%s820_s2 + $0x8] sm:$0xf]  ;;  %v52_v4 = vld [vmem:[%s820_s2] sm:$0xff]  ;;  %269 = vst.msk [vmem:[#allocation2 + $0x190] sm:$0xf0] %vm121_vm0, %v557_v5  ;;  %vm30_vm3 = vcmask 1043456  }
   0x3   :  { %79 = vst [vmem:[#allocation2 + $0x18] sm:$0xf] %v557_v5  ;;  %108 = vst [vmem:[#allocation2 + $0x18] sm:$0xf0] %v557_v5  ;;  %447 = vmatprep.subr.mxu1 %v557_v5  ;;  %v20_v6 = vld [vmem:[%s821_s0] sm:$0xff]  ;;  %vm80_vm4 = vcmask 257024  }
   0x4   :  { %125 = vst.msk [vmem:[#allocation2 + $0x48] sm:$0xff] %vm102_vm1, %v557_v5  ;;  %255 = vst.msk [vmem:[#allocation2 + $0x160] sm:$0xff] %vm102_vm1, %v557_v5  ;;  %v21_v7 = vld [vmem:[%s821_s0 + $0x8] sm:$0xf]  ;;  %v24_v8 = vcombine.high %v20_v6, %v20_v6  ;;  %v26_v9 = vcombine.low %v20_v6, %v20_v6  ;;  %vm244_vm5 = vcmask 781568   ;;  %vm77_vm6 = vcmask 261120  }
   0x5   :  { %261 = vst.msk [vmem:[#allocation2 + $0x178] sm:$0xff] %vm102_vm1, %v557_v5  ;;  %271 = vst.msk [vmem:[#allocation2 + $0x1a8] sm:$0xff] %vm102_vm1, %v557_v5  ;;  %v27_v10 = vcombine.low %v21_v7, %v21_v7  ;;  %vm106_vm7 = vcmask 781312   ;;  %vm242_vm8 = vcmask 785664   ;;  %s558_s0 = smov 96   ;;  %vm147_vm9 = vcmask 1044224  }
   0x6   :  { %61 = vperm.xlu1 %552, %v53_v3   ;;  %56 = vperm.xlu0 %551, %v52_v4   ;;  %260 = vst.msk [vmem:[#allocation2 + $0x170] sm:$0xff] %vm143_vm2, %v557_v5  ;;  %v31_v13 = vsel %vm30_vm3, %v20_v6, %v26_v9  ;;  %v32_v14 = vsel %vm30_vm3, %v24_v8, %v20_v6  ;;  %vm151_vm10 = vcmask 523268   ;;  %vm182_vm11 = vcmask 1048068   ;;  %v337_v47 = vld [vmem:[%s822_s4 + $0x8] sm:$0xff]  ;;  %v336_v48 = vld [vmem:[%s822_s4] sm:$0xff]  ;;  %v338_v49 = vld [vmem:[%s822_s4 + $0x10] sm:$0xff] }
   0x7   :  { %245 = vst.msk [vmem:[#allocation2 + $0x148] sm:$0xf] %vm244_vm5, %v557_v5  ;;  %v33_v18 = vsel %vm30_vm3, %v21_v7, %v27_v10  ;;  %vm230_vm12 = vcmask 785924   ;;  %vm153_vm13 = vcmask 523264   ;;  %vm186_vm14 = vcmask 1048064   ;;  %v277_v50 = vld [vmem:[%s823_s3 + $0x8] sm:$0xff] }
   0x8   :  { %81 = vst.msk [vmem:[#allocation2 + $0x20] sm:$0xf] %vm80_vm4, %v557_v5  ;;  %191 = vst.msk [vmem:[#allocation2 + $0xa8] sm:$0xf] %vm80_vm4, %v557_v5  ;;  %vm232_vm15 = vcmask 785920   ;;  %vm104_vm5 = vcmask 1043712  }
   0x9   :  { %78 = vst.msk [vmem:[#allocation2 + $0x8] sm:$0xff] %vm77_vm6, %v557_v5  ;;  %190 = vst.msk [vmem:[#allocation2 + $0x90] sm:$0xff] %vm77_vm6, %v557_v5 }
   0xa   :  { %263 = vst.msk [vmem:[#allocation2 + $0x190] sm:$0xf] %vm106_vm7, %v557_v5  ;;  %126 = vst.msk [vmem:[#allocation2 + $0x60] sm:$0xf] %vm106_vm7, %v557_v5 }
   0xb   :  { %v326_v31 = vld [vmem:[#allocation2 + $0x160] sm:$0xff]  ;;  %243 = vst.msk [vmem:[#allocation2 + $0x130] sm:$0xff] %vm242_vm8, %v557_v5 }
   0xc   :  { %v329_v24 = vld [vmem:[#allocation2 + $0x178] sm:$0xff]  ;;  %262 = vst.msk [vmem:[#allocation2 + $0x188] sm:$0xf] %vm147_vm9, %v557_v5 }
   0xd   :  { %448 = vmatpush1.msra.mxu1 %v329_v24  ;;  %231 = vst.msk [vmem:[#allocation2 + $0x100] sm:$0xf0] %vm230_vm12, %v557_v5 }
   0xe   :  { %449 = vmatprep.subr.mxu1 %v557_v5  ;;  %268 = vst.msk [vmem:[#allocation2 + $0x188] sm:$0xf0] %vm182_vm11, %v557_v5 }
   0xf   :  { %450 = vmatpush1.msra.mxu1 %v326_v31  ;;  %152 = vst.msk [vmem:[#allocation2 + $0x60] sm:$0xf0] %vm151_vm10, %v557_v5 }
  0x10   :  { %451 = vmatprep.subr.mxu1 %v557_v5  ;;  %154 = vst.msk [vmem:[#allocation2 + $0x78] sm:$0xff] %vm153_vm13, %v557_v5 }
  0x11   :  { %233 = vst.msk [vmem:[#allocation2 + $0x118] sm:$0xff] %vm232_vm15, %v557_v5 }
  0x12   :  { %270 = vst.msk [vmem:[#allocation2 + $0x1a0] sm:$0xff] %vm186_vm14, %v557_v5 }
  0x7d   :  { %v44_v11 = vpop.permute.xlu1 %43  ;;  %v39_v12 = vpop.permute.xlu0 %38 }
  0x7e   :  { %v49_v15 = vmul.f32 %v44_v11, %v20_v6  ;;  %v50_v16 = vmul.f32 %v44_v11, %v24_v8  ;;  %v51_v17 = vmul.f32 %v44_v11, %v21_v7  ;;  %v46_v19 = vmul.f32 %v39_v12, %v31_v13 }
  0x7f   :  { %v47_v20 = vmul.f32 %v39_v12, %v32_v14  ;;  %v48_v21 = vmul.f32 %v39_v12, %v33_v18 }
  0x81   :  { %v62_v22 = vpop.permute.xlu1 %61  ;;  %v57_v23 = vpop.permute.xlu0 %56 }
  0x82   :  { %v67_v25 = vadd.f32 %v62_v22, %v49_v15  ;;  %v68_v26 = vadd.f32 %v62_v22, %v50_v16  ;;  %v69_v27 = vadd.f32 %v62_v22, %v51_v17  ;;  %v64_v28 = vadd.f32 %v57_v23, %v46_v19 }
  0x83   :  { %v65_v29 = vadd.f32 %v57_v23, %v47_v20  ;;  %v66_v30 = vadd.f32 %v57_v23, %v48_v21 }
  0x84   :  { %v75_v32 = vmax.f32 %v69_v27, 0.0  ;;  %v74_v33 = vmax.f32 %v68_v26, 0.0  ;;  %v73_v34 = vmax.f32 %v67_v25, 0.0  ;;  %v70_v35 = vmax.f32 %v64_v28, 0.0 }
  0x85   :  { %v72_v36 = vmax.f32 %v66_v30, 0.0  ;;  %v71_v37 = vmax.f32 %v65_v29, 0.0 }
  0x86   :  { %v110_v38 = vrot.slane %v70_v35, 4  ;;  %v158_v39 = vrot.slane %v75_v32, 4  ;;  %v114_v40 = vrot.slane %v74_v33, 4  ;;  %v112_v41 = vrot.slane %v73_v34, 4 }
  0x87   :  { %214 = vrot.lane.b32.xlu1 %v72_v36, %s558_s0  ;;  %129 = vrot.lane.b32.xlu0 %v71_v37, %s558_s0  ;;  %v111_v42 = vrot.slane %v71_v37, 4  ;;  %v157_v43 = vrot.slane %v72_v36, 4 }
  0x88   :  { %120 = vst [vmem:[#allocation2 + $0x20] sm:$0xf0] %v110_v38  ;;  %208 = vst [vmem:[#allocation2 + $0xa8] sm:$0xf0] %v110_v38  ;;  %v648_v44 = vsel %vm30_vm3, %v110_v38, %v112_v41 }
  0x89   :  { %122 = vst.msk [vmem:[#allocation2 + $0x28] sm:$0xf0] %vm121_vm0, %v111_v42  ;;  %209 = vst [vmem:[#allocation2 + $0xb0] sm:$0xf0] %v111_v42  ;;  %v653_v45 = vsel %vm30_vm3, %v157_v43, %v158_v39  ;;  %v656_v46 = vsel %vm30_vm3, %v111_v42, %v114_v40  ;;  %vm354_vm3 = vcmask 130048  }
  0x8a   :  { %256 = vst [vmem:[#allocation2 + $0x138] sm:$0xf0] %v111_v42  ;;  %210 = vst.msk [vmem:[#allocation2 + $0xb8] sm:$0xf0] %vm121_vm0, %v157_v43  ;;  %543 = vmatprep.mubr.msk.f32.mxu1 %vm354_vm3, %v277_v50  ;;  %540 = vmatprep.mubr.msk.f32.mxu0 %vm354_vm3, %v277_v50  ;;  %v279_v50 = vld [vmem:[%s823_s3 + $0x18] sm:$0xff] }
  0x8b   :  { %257 = vst [vmem:[#allocation2 + $0x140] sm:$0xf0] %v157_v43  ;;  %213 = vst.msk [vmem:[#allocation2 + $0xd0] sm:$0xff] %vm102_vm1, %v653_v45  ;;  %194 = vrot.lane.b32.xlu1 %v75_v32, %s559_s28  ;;  %92 = vrot.lane.b32.xlu0 %v74_v33, %s559_s28 }
  0x8c   :  { %124 = vst.msk [vmem:[#allocation2 + $0x40] sm:$0xff] %vm102_vm1, %v656_v46 }
  0x8f   :  { %88 = vrot.lane.b32.xlu1 %v71_v37, %s559_s28  ;;  %90 = vrot.lane.b32.xlu0 %v73_v34, %s559_s28 }
  0x92   :  { %v308_v27 = vld [vmem:[#allocation2 + $0xd0] sm:$0xff] }
  0x93   :  { %86 = vrot.lane.b32.xlu1 %v70_v35, %s559_s28  ;;  %192 = vrot.lane.b32.xlu0 %v72_v36, %s559_s28  ;;  %v290_v37 = vld [vmem:[#allocation2 + $0x40] sm:$0xff] }
  0x97   :  { %133 = vrot.lane.b32.xlu1 %v74_v33, %s558_s0  ;;  %216 = vrot.lane.b32.xlu0 %v75_v32, %s558_s0 }
  0x9b   :  { %164 = vrot.lane.b32.xlu1 %v157_v43, %s560_s29  ;;  %162 = vrot.lane.b32.xlu0 %v111_v42, %s560_s29  ;;  %v335_v43 = vld [vmem:[#allocation2 + $0x1a8] sm:$0xff] }
  0x9f   :  { %170 = vrot.lane.b32.xlu1 %v653_v45, %s560_s29  ;;  %168 = vrot.lane.b32.xlu0 %v656_v46, %s560_s29 }
  0xa3   :  { %131 = vrot.lane.b32.xlu1 %v73_v34, %s558_s0  ;;  %166 = vrot.lane.b32.xlu0 %v648_v44, %s560_s29 }
  0xa7   :  { %127 = vrot.lane.b32.xlu1 %v70_v35, %s558_s0  ;;  %160 = vrot.lane.b32.xlu0 %v110_v38, %s560_s29 }
  0xab   :  { %346 = vperm.xlu1 %552, %v337_v47   ;;  %341 = vperm.xlu0 %551, %v336_v48   ;;  %v285_v47 = vld [vmem:[#allocation2 + $0x18] sm:$0xff]  ;;  %v276_v48 = vld [vmem:[%s823_s3] sm:$0xff] }
  0xaf   :  { %351 = vperm.xlu0 %551, %v338_v49  }
  0xf9   :  { %v215_v51 = vpop.permute.xlu1 %214  ;;  %v695_v52 = vpop.permute.xlu0 %129 }
  0xfa   :  { %226 = vst.msk [vmem:[#allocation2 + $0xe8] sm:$0xff] %vm102_vm1, %v215_v51  ;;  %265 = vst.msk [vmem:[#allocation2 + $0x170] sm:$0xff] %vm102_vm1, %v215_v51  ;;  %v703_v53 = vsel %vm102_vm1, %v695_v52, %v215_v51  ;;  %v278_v51 = vld [vmem:[%s823_s3 + $0x10] sm:$0xff] }
  0xfb   :  { %146 = vst.msk [vmem:[#allocation2 + $0x58] sm:$0xff] %vm102_vm1, %v695_v52 }
  0xfd   :  { %v195_v54 = vpop.permute.xlu1 %194  ;;  %v93_v55 = vpop.permute.xlu0 %92 }
  0xfe   :  { %253 = vst.msk [vmem:[#allocation2 + $0x148] sm:$0xf] %vm80_vm4, %v195_v54  ;;  %v197_v56 = vsel %vm77_vm6, %v93_v55, %v195_v54  ;;  %vm100_vm4 = vcmask 1047808  }
  0xff   :  { %205 = vst.msk [vmem:[#allocation2 + $0xb8] sm:$0xf] %vm106_vm7, %v197_v56  ;;  %252 = vst [vmem:[#allocation2 + $0x140] sm:$0xf] %v197_v56  ;;  %v280_v56 = vld [vmem:[%s823_s3 + $0x20] sm:$0xff] }
 0x101   :  { %v89_v57 = vpop.permute.xlu1 %88  ;;  %v91_v58 = vpop.permute.xlu0 %90  ;;  %v328_v59 = vld [vmem:[#allocation2 + $0x170] sm:$0xff]  ;;  %v311_v26 = vld [vmem:[#allocation2 + $0xe8] sm:$0xff] }
 0x102   :  { %v95_v60 = vsel %vm77_vm6, %v91_v58, %v93_v55  ;;  %105 = vst.msk [vmem:[#allocation2 + $0x20] sm:$0xf] %vm104_vm5, %v91_v58  ;;  %203 = vst.msk [vmem:[#allocation2 + $0xa8] sm:$0xf] %vm104_vm5, %v91_v58  ;;  %364 = vmatprep.subr.mxu0 %v328_v59  ;;  %v293_v35 = vld [vmem:[#allocation2 + $0x58] sm:$0xff] }
 0x103   :  { %107 = vst.msk [vmem:[#allocation2 + $0x28] sm:$0xf] %vm106_vm7, %v95_v60  ;;  %204 = vst [vmem:[#allocation2 + $0xb0] sm:$0xf] %v95_v60  ;;  %365 = vmatpush1.msra.mxu0 %v703_v53 }
 0x104   :  { %251 = vst [vmem:[#allocation2 + $0x138] sm:$0xf] %v95_v60  ;;  %366 = vmatprep.subr.mxu0 %v653_v45 }
 0x105   :  { %v87_v61 = vpop.permute.xlu1 %86  ;;  %v193_v62 = vpop.permute.xlu0 %192  ;;  %367 = vmatpush1.msra.mxu0 %v656_v46  ;;  %v323_v63 = vld [vmem:[#allocation2 + $0x148] sm:$0xff] }
 0x106   :  { %v714_v0 = vsel %vm77_vm6, %v87_v61, %v89_v57  ;;  %101 = vst.msk [vmem:[#allocation2 + $0x8] sm:$0xff] %vm100_vm4, %v87_v61  ;;  %200 = vst.msk [vmem:[#allocation2 + $0x90] sm:$0xff] %vm100_vm4, %v87_v61  ;;  %v196_v1 = vsel %vm77_vm6, %v89_v57, %v193_v62  ;;  %452 = vmatpush1.msra.mxu1 %v323_v63  ;;  %v322_v2 = vld [vmem:[#allocation2 + $0x140] sm:$0xff]  ;;  %v305_v28 = vld [vmem:[#allocation2 + $0xb8] sm:$0xff] }
 0x107   :  { %250 = vst.msk [vmem:[#allocation2 + $0x130] sm:$0xff] %vm77_vm6, %v193_v62  ;;  %368 = vmatprep.subr.mxu0 %v322_v2  ;;  %453 = vmatprep.subr.mxu1 %v557_v5 }
 0x108   :  { %103 = vst.msk [vmem:[#allocation2 + $0x10] sm:$0xff] %vm102_vm1, %v714_v0  ;;  %202 = vst.msk [vmem:[#allocation2 + $0xa0] sm:$0xff] %vm102_vm1, %v196_v1 }
 0x109   :  { %v134_v3 = vpop.permute.xlu1 %133  ;;  %v217_v4 = vpop.permute.xlu0 %216  ;;  %v303_v34 = vld [vmem:[#allocation2 + $0xa8] sm:$0xff]  ;;  %v286_v49 = vld [vmem:[#allocation2 + $0x20] sm:$0xff] }
 0x10a   :  { %150 = vst.msk [vmem:[#allocation2 + $0x70] sm:$0xf] %vm106_vm7, %v134_v3  ;;  %v219_v6 = vsel %vm102_vm1, %v134_v3, %v217_v4  ;;  %229 = vst.msk [vmem:[#allocation2 + $0x100] sm:$0xf] %vm106_vm7, %v217_v4  ;;  %v304_v32 = vld [vmem:[#allocation2 + $0xb0] sm:$0xff]  ;;  %v287_v40 = vld [vmem:[#allocation2 + $0x28] sm:$0xff] }
 0x10b   :  { %267 = vst.msk [vmem:[#allocation2 + $0x188] sm:$0xf] %vm106_vm7, %v217_v4  ;;  %v321_v7 = vld [vmem:[#allocation2 + $0x138] sm:$0xff]  ;;  %228 = vst [vmem:[#allocation2 + $0xf8] sm:$0xf] %v219_v6 }
 0x10c   :  { %266 = vst [vmem:[#allocation2 + $0x180] sm:$0xf] %v219_v6  ;;  %369 = vmatpush1.msra.mxu0 %v321_v7 }
 0x10d   :  { %370 = vmatprep.subr.mxu0 %v196_v1  ;;  %v165_v8 = vpop.permute.xlu1 %164  ;;  %v163_v9 = vpop.permute.xlu0 %162  ;;  %v300_v36 = vld [vmem:[#allocation2 + $0x90] sm:$0xff] }
 0x10e   :  { %v320_v10 = vld [vmem:[#allocation2 + $0x130] sm:$0xff]  ;;  %371 = vmatpush1.msra.mxu0 %v714_v0  ;;  %238 = vst.msk [vmem:[#allocation2 + $0x100] sm:$0xf0] %vm151_vm10, %v165_v8  ;;  %273 = vst.msk [vmem:[#allocation2 + $0x188] sm:$0xf0] %vm151_vm10, %v165_v8  ;;  %v173_v11 = vsel %vm153_vm13, %v163_v9, %v165_v8 }
 0x10f   :  { %454 = vmatpush1.msra.mxu1 %v320_v10  ;;  %185 = vst.msk [vmem:[#allocation2 + $0x70] sm:$0xf0] %vm121_vm0, %v173_v11  ;;  %237 = vst [vmem:[#allocation2 + $0xf8] sm:$0xf0] %v173_v11  ;;  %v302_v30 = vld [vmem:[#allocation2 + $0xa0] sm:$0xff]  ;;  %v284_v42 = vld [vmem:[#allocation2 + $0x10] sm:$0xff] }
 0x110   :  { %272 = vst [vmem:[#allocation2 + $0x180] sm:$0xf0] %v173_v11  ;;  %455 = vmatprep.subr.mxu1 %v557_v5 }
 0x111   :  { %v171_v12 = vpop.permute.xlu1 %170  ;;  %v169_v13 = vpop.permute.xlu0 %168 }
 0x112   :  { %241 = vst.msk [vmem:[#allocation2 + $0x118] sm:$0xff] %vm153_vm13, %v171_v12  ;;  %275 = vst.msk [vmem:[#allocation2 + $0x1a0] sm:$0xff] %vm153_vm13, %v171_v12  ;;  %v735_v14 = vsel %vm153_vm13, %v169_v13, %v171_v12 }
 0x113   :  { %189 = vst.msk [vmem:[#allocation2 + $0x88] sm:$0xff] %vm102_vm1, %v735_v14  ;;  %372 = vmatprep.subr.mxu0 %v735_v14 }
 0x115   :  { %v132_v15 = vpop.permute.xlu1 %131  ;;  %v167_v16 = vpop.permute.xlu0 %166  ;;  %v314_v25 = vld [vmem:[#allocation2 + $0x100] sm:$0xff]  ;;  %v331_v54 = vld [vmem:[#allocation2 + $0x188] sm:$0xff] }
 0x116   :  { %v136_v17 = vsel %vm102_vm1, %v132_v15, %v134_v3  ;;  %148 = vst.msk [vmem:[#allocation2 + $0x60] sm:$0xf] %vm147_vm9, %v132_v15  ;;  %v174_v18 = vsel %vm153_vm13, %v167_v16, %v169_v13  ;;  %v313_v19 = vld [vmem:[#allocation2 + $0xf8] sm:$0xff]  ;;  %v296_v33 = vld [vmem:[#allocation2 + $0x70] sm:$0xff] }
 0x117   :  { %187 = vst.msk [vmem:[#allocation2 + $0x78] sm:$0xff] %vm186_vm14, %v167_v16  ;;  %149 = vst [vmem:[#allocation2 + $0x68] sm:$0xf] %v136_v17  ;;  %373 = vmatpush1.msra.mxu0 %v174_v18  ;;  %v330_v55 = vld [vmem:[#allocation2 + $0x180] sm:$0xff] }
 0x118   :  { %227 = vst [vmem:[#allocation2 + $0xf0] sm:$0xf] %v136_v17  ;;  %374 = vmatprep.subr.mxu0 %v313_v19 }
 0x119   :  { %v128_v20 = vpop.permute.xlu1 %127  ;;  %v161_v21 = vpop.permute.xlu0 %160  ;;  %v317_v22 = vld [vmem:[#allocation2 + $0x118] sm:$0xff] }
 0x11a   :  { %v135_v23 = vsel %vm102_vm1, %v128_v20, %v695_v52  ;;  %144 = vst.msk [vmem:[#allocation2 + $0x48] sm:$0xff] %vm143_vm2, %v128_v20  ;;  %v172_v24 = vsel %vm153_vm13, %v161_v21, %v163_v9  ;;  %456 = vmatpush1.msra.mxu1 %v317_v22  ;;  %v299_v31 = vld [vmem:[#allocation2 + $0x88] sm:$0xff]  ;;  %v334_v52 = vld [vmem:[#allocation2 + $0x1a0] sm:$0xff] }
 0x11b   :  { %183 = vst.msk [vmem:[#allocation2 + $0x60] sm:$0xf0] %vm182_vm11, %v161_v21  ;;  %184 = vst [vmem:[#allocation2 + $0x68] sm:$0xf0] %v172_v24  ;;  %457 = vmatprep.subr.mxu1 %v557_v5 }
 0x11c   :  { %236 = vst [vmem:[#allocation2 + $0xf0] sm:$0xf0] %v172_v24  ;;  %458 = vmatpush1.msra.mxu1 %v314_v25 }
 0x11d   :  { %459 = vmatprep.subr.mxu1 %v557_v5 }
 0x11e   :  { %460 = vmatpush1.msra.mxu1 %v311_v26  ;;  %v297_v38 = vld [vmem:[#allocation2 + $0x78] sm:$0xff] }
 0x11f   :  { %461 = vmatprep.subr.mxu1 %v557_v5 }
 0x120   :  { %462 = vmatpush1.msra.mxu1 %v308_v27 }
 0x121   :  { %463 = vmatprep.subr.mxu1 %v557_v5  ;;  %v291_v45 = vld [vmem:[#allocation2 + $0x48] sm:$0xff] }
 0x122   :  { %464 = vmatpush1.msra.mxu1 %v305_v28  ;;  %v295_v39 = vld [vmem:[#allocation2 + $0x68] sm:$0xff]  ;;  %v294_v41 = vld [vmem:[#allocation2 + $0x60] sm:$0xff] }
 0x123   :  { %v312_v29 = vld [vmem:[#allocation2 + $0xf0] sm:$0xff]  ;;  %465 = vmatprep.subr.mxu1 %v557_v5 }
 0x124   :  { %375 = vmatpush1.msra.mxu0 %v312_v29  ;;  %466 = vmatpush1.msra.mxu1 %v302_v30 }
 0x125   :  { %376 = vmatprep.subr.mxu0 %v703_v53  ;;  %467 = vmatprep.subr.mxu1 %v557_v5  ;;  %v281_v53 = vld [vmem:[%s823_s3 + $0x28] sm:$0xff] }
 0x126   :  { %377 = vmatpush1.msra.mxu0 %v135_v23  ;;  %468 = vmatpush1.msra.mxu1 %v299_v31  ;;  %v347_v60 = vpop.permute.xlu1 %346 }
 0x127   :  { %378 = vmatprep.subr.mxu0 %v656_v46  ;;  %469 = vmatprep.subr.mxu1 %v557_v5  ;;  %v332_v46 = vld [vmem:[#allocation2 + $0x190] sm:$0xff] }
 0x128   :  { %379 = vmatpush1.msra.mxu0 %v648_v44  ;;  %470 = vmatpush1.msra.mxu1 %v296_v33 }
 0x129   :  { %380 = vmatprep.subr.mxu0 %v304_v32  ;;  %471 = vmatprep.subr.mxu1 %v557_v5 }
 0x12a   :  { %381 = vmatpush1.msra.mxu0 %v303_v34  ;;  %472 = vmatpush1.msra.mxu1 %v293_v35 }
 0x12b   :  { %382 = vmatprep.subr.mxu0 %v714_v0  ;;  %473 = vmatprep.subr.mxu1 %v557_v5 }
 0x12c   :  { %383 = vmatpush1.msra.mxu0 %v300_v36  ;;  %474 = vmatpush1.msra.mxu1 %v290_v37 }
 0x12d   :  { %384 = vmatprep.subr.mxu0 %v174_v18  ;;  %475 = vmatprep.subr.mxu1 %v557_v5 }
 0x12e   :  { %385 = vmatpush1.msra.mxu0 %v297_v38  ;;  %476 = vmatpush1.msra.mxu1 %v287_v40 }
 0x12f   :  { %386 = vmatprep.subr.mxu0 %v295_v39  ;;  %477 = vmatprep.subr.mxu1 %v557_v5 }
 0x130   :  { %387 = vmatpush1.msra.mxu0 %v294_v41  ;;  %478 = vmatpush1.msra.mxu1 %v284_v42 }
 0x131   :  { %388 = vmatprep.subr.mxu0 %v135_v23  ;;  %507 = vmatprep.subr.mxu1 %v557_v5 }
 0x132   :  { %389 = vmatpush1.msra.mxu0 %v291_v45  ;;  %508 = vmatpush2.msra.mxu1 %v335_v43 }
 0x133   :  { %390 = vmatprep.subr.mxu0 %v648_v44  ;;  %509 = vmatprep.subr.mxu1 %v557_v5  ;;  %v283_v44 = vld [vmem:[#allocation2 + $0x8] sm:$0xff] }
 0x134   :  { %391 = vmatpush1.msra.mxu0 %v557_v5  ;;  %510 = vmatpush2.msra.mxu1 %v332_v46 }
 0x135   :  { %392 = vmatprep.subr.mxu0 %v286_v49  ;;  %512 = vmatmul.mubr.f32.vlgmr.msra.gmra.mxu1 %v276_v48 }
 0x136   :  { %393 = vmatpush1.msra.mxu0 %v285_v47  ;;  %544 = vmatprep.mubr.msk.f32.mxu1 %vm354_vm3, %v279_v50 }
 0x137   :  { %394 = vmatprep.subr.mxu0 %v283_v44 }
 0x138   :  { %395 = vmatpush1.msra.mxu0 %v557_v5  ;;  %v342_v5 = vpop.permute.xlu0 %341 }
 0x139   :  { %424 = vmatprep.subr.mxu0 %v334_v52  ;;  %517 = vmatmul.mubr.f32.gmra.mxu1 %v278_v51 }
 0x13a   :  { %425 = vmatpush2.msra.mxu0 %v735_v14  ;;  %545 = vmatprep.mubr.msk.f32.mxu1 %vm354_vm3, %v281_v53 }
 0x13b   :  { %426 = vmatprep.subr.mxu0 %v331_v54 }
 0x13c   :  { %427 = vmatpush2.msra.mxu0 %v330_v55  ;;  %v352_v1 = vpop.permute.xlu0 %351 }
 0x13d   :  { %429 = vmatmul.mubr.f32.vlgmr.msra.gmra.mxu0 %v276_v48  ;;  %522 = vmatmul.mubr.f32.gmra.mxu1 %v280_v56 }
 0x13e   :  { %541 = vmatprep.mubr.msk.f32.mxu0 %vm354_vm3, %v279_v50 }
 0x141   :  { %435 = vmatmul.mubr.f32.gmra.mxu0 %v278_v51 }
 0x142   :  { %542 = vmatprep.mubr.msk.f32.mxu0 %vm354_vm3, %v281_v53 }
 0x145   :  { %441 = vmatmul.mubr.f32.gmra.mxu0 %v280_v56 }
 0x1f5   :  { %v513_v57 = vpop.f32.mrf.mxu1 }
 0x1f6   :  { %v514_v58 = vadd.f32 %v513_v57, %v342_v5 }
 0x1f7   :  { %v515_v59 = vpop.f32.mrf.mxu1 }
 0x1f8   :  { %529 = vst.msk [vmem:[%s824_s5 + $0x10] sm:$0xff] %vm102_vm1, %v514_v58 }
 0x1f9   :  { %v518_v61 = vpop.f32.mrf.mxu1 }
 0x1fa   :  { %v519_v62 = vadd.f32 %v518_v61, %v347_v60 }
 0x1fb   :  { %v520_v63 = vpop.f32.mrf.mxu1 }
 0x1fc   :  { %532 = vst.msk [vmem:[%s824_s5 + $0x28] sm:$0xff] %vm102_vm1, %v519_v62 }
 0x1fd   :  { %v430_v0 = vpop.f32.mrf.mxu0  ;;  %v523_v3 = vpop.f32.mrf.mxu1 }
 0x1fe   :  { %v431_v2 = vadd.f32 %v430_v0, %v342_v5  ;;  %v524_v4 = vadd.f32 %v523_v3, %v352_v1 }
 0x1ff   :  { %v432_v6 = vpop.f32.mrf.mxu0  ;;  %v525_v8 = vpop.f32.mrf.mxu1 }
 0x200   :  { %527 = vst [vmem:[%s824_s5] sm:$0xff] %v431_v2  ;;  %v433_v7 = vadd.f32 %v432_v6, %v342_v5  ;;  %535 = vst.msk [vmem:[%s824_s5 + $0x40] sm:$0xff] %vm102_vm1, %v524_v4 }
 0x201   :  { %v436_v9 = vpop.f32.mrf.mxu0 }
 0x202   :  { %528 = vst [vmem:[%s824_s5 + $0x8] sm:$0xff] %v433_v7  ;;  %v437_v10 = vadd.f32 %v436_v9, %v347_v60 }
 0x203   :  { %v438_v11 = vpop.f32.mrf.mxu0 }
 0x204   :  { %530 = vst [vmem:[%s824_s5 + $0x18] sm:$0xff] %v437_v10  ;;  %v439_v12 = vadd.f32 %v438_v11, %v347_v60 }
 0x205   :  { %v442_v13 = vpop.f32.mrf.mxu0 }
 0x206   :  { %531 = vst [vmem:[%s824_s5 + $0x20] sm:$0xff] %v439_v12  ;;  %v443_v14 = vadd.f32 %v442_v13, %v352_v1 }
 0x207   :  { %v444_v15 = vpop.f32.mrf.mxu0 }
 0x208   :  { %533 = vst [vmem:[%s824_s5 + $0x30] sm:$0xff] %v443_v14  ;;  %v445_v16 = vadd.f32 %v444_v15, %v352_v1 }
 0x20a   :  { %534 = vst [vmem:[%s824_s5 + $0x38] sm:$0xff] %v445_v16 }

</bundles_post_ra>
